<compile_context>
chip_gen: v7x
topology: tpu7x:2x2x1
jax: 0.10.0
libtpu: 0.0.40
codegen_flags: <defaults>
</compile_context>

<pallas_src>
import numpy as np
import jax
import jax.numpy as jnp
from jax import lax
from jax.experimental import pallas as pl
from jax.experimental.pallas import tpu as pltpu


def _tap_masks(H, W):
    """(9, H*W) float32 validity masks for the 3x3 taps (zero padding)."""
    ys = np.arange(H).reshape(H, 1)
    xs = np.arange(W).reshape(1, W)
    masks = []
    for dy in (-1, 0, 1):
        for dx in (-1, 0, 1):
            valid = ((ys + dy >= 0) & (ys + dy < H) &
                     (xs + dx >= 0) & (xs + dx < W))
            masks.append(valid.reshape(H * W))
    return jnp.asarray(np.stack(masks), dtype=jnp.float32)


def _make_resblock_kernel(H, W, C, matmul_dtype):
    HW = H * W
    # Tap (dy, dx) reads flattened input element p + (dy-1)*W + (dx-1).
    shifts = [((dy - 1) * W + (dx - 1)) % HW
              for dy in range(3) for dx in range(3)]

    def shift_lanes(a, s):
        # b[:, p] = a[:, (p + s) mod HW]; wrapped entries are masked to 0 later.
        if s == 0:
            return a
        return jnp.concatenate([a[:, s:], a[:, :s]], axis=1)

    def kernel(x_ref, m_ref, w1_ref, b1_ref, w2_ref, b2_ref, o_ref):
        x = x_ref[0]           # (C, HW) f32, one image, spatial on lanes
        masks = m_ref[...]     # (9, HW) f32 0/1 edge masks (shared by both convs)

        def conv3x3(act, w_ref, b_ref):
            # act: (Cin, HW); w_ref: (9, Cout, Cin); b_ref: (Cout, 1)
            w = w_ref[...]
            acc = None
            for t in range(9):
                tap = shift_lanes(act, shifts[t]) * masks[t:t + 1]  # (Cin, HW)
                wt = w[t]
                if matmul_dtype is not None:        # bf16 MXU operands (v6e/v7x)
                    tap = tap.astype(matmul_dtype)
                    wt = wt.astype(matmul_dtype)
                part = jnp.dot(wt, tap, preferred_element_type=jnp.float32)
                acc = part if acc is None else acc + part
            return acc + b_ref[...]                 # (Cout, 1) broadcast over lanes

        xr = jnp.maximum(x, 0.0)                                   # relu(x)
        h1 = jnp.maximum(conv3x3(xr, w1_ref, b1_ref), 0.0)         # relu(conv1)
        h2 = conv3x3(h1, w2_ref, b2_ref)                           # conv2
        o_ref[...] = (h2 + x)[None].astype(o_ref.dtype)            # + residual

    return kernel


def residual_block(x_nchw, w1_oihw, b1, w2_oihw, b2, *, matmul_dtype=None):
    """x_nchw: (N, C, H, W); weights in torch OIHW layout; biases (C,).

    matmul_dtype: pass jnp.bfloat16 on v6e/v7x to run the MXU contraction with
    bf16 operands (f32 accumulation); None keeps exact f32 operands.
    """
    N, C, H, W = x_nchw.shape
    HW = H * W

    x = x_nchw.reshape(N, C, HW)                 # free reshape (trailing dims)
    # torch OIHW -> per-tap (Cout, Cin) matrices, tap index t = kh*3 + kw
    w1m = jnp.transpose(w1_oihw, (2, 3, 0, 1)).reshape(9, C, C)
    w2m = jnp.transpose(w2_oihw, (2, 3, 0, 1)).reshape(9, C, C)
    b1m = b1.reshape(C, 1).astype(jnp.float32)
    b2m = b2.reshape(C, 1).astype(jnp.float32)
    masks = _tap_masks(H, W)                     # (9, HW) constants

    kernel = _make_resblock_kernel(H, W, C, matmul_dtype)
    const2 = lambda n: (0, 0)
    const3 = lambda n: (0, 0, 0)

    out = pl.pallas_call(
        kernel,
        out_shape=jax.ShapeDtypeStruct((N, C, HW), x_nchw.dtype),
        grid_spec=pltpu.PrefetchScalarGridSpec(
            num_scalar_prefetch=0,
            grid=(N,),
            in_specs=[
                pl.BlockSpec((1, C, HW), lambda n: (n, 0, 0)),   # x, one image
                pl.BlockSpec((9, HW), const2),                   # tap masks
                pl.BlockSpec((9, C, C), const3),                 # conv1 weight
                pl.BlockSpec((C, 1), const2),                    # conv1 bias
                pl.BlockSpec((9, C, C), const3),                 # conv2 weight
                pl.BlockSpec((C, 1), const2),                    # conv2 bias
            ],
            out_specs=pl.BlockSpec((1, C, HW), lambda n: (n, 0, 0)),
        ),
        compiler_params=pltpu.CompilerParams(
            dimension_semantics=("parallel",)),
    )(x, masks, w1m, b1m, w2m, b2m)

    return out.reshape(N, C, H, W)


def ref_forward(x, w1, b1, w2, b2):
    """Pure-JAX reference (NCHW, same semantics as the torch module)."""
    dn = lax.conv_dimension_numbers(x.shape, w1.shape, ("NCHW", "OIHW", "NCHW"))
    out = jnp.maximum(x, 0.0)
    out = lax.conv_general_dilated(out, w1, (1, 1), ((1, 1), (1, 1)),
                                   dimension_numbers=dn) + b1.reshape(1, -1, 1, 1)
    out = jnp.maximum(out, 0.0)
    out = lax.conv_general_dilated(out, w2, (1, 1), ((1, 1), (1, 1)),
                                   dimension_numbers=dn) + b2.reshape(1, -1, 1, 1)
    return out + x


if __name__ == "__main__":
    N, C, H, W = 2, 4, 16, 16   # in_channels == out_channels so the residual add is valid
    key = jax.random.PRNGKey(0)
    kx, k1, k2, k3, k4 = jax.random.split(key, 5)

    x = jax.random.normal(kx, (N, C, H, W), dtype=jnp.float32)
    # Deterministic synthetic parameters (torch Conv2d shapes: (Cout, Cin, 3, 3), (Cout,))
    w1 = 0.1 * jax.random.normal(k1, (C, C, 3, 3), dtype=jnp.float32)
    b1 = 0.1 * jax.random.normal(k2, (C,), dtype=jnp.float32)
    w2 = 0.1 * jax.random.normal(k3, (C, C, 3, 3), dtype=jnp.float32)
    b2 = 0.1 * jax.random.normal(k4, (C,), dtype=jnp.float32)

    out = residual_block(x, w1, b1, w2, b2)
    out = jax.block_until_ready(out)

    ref = ref_forward(x, w1, b1, w2, b2)
    assert out.shape == (N, C, H, W)
    err = jnp.max(jnp.abs(out - ref))
    assert jnp.allclose(out, ref, rtol=1e-4, atol=1e-4), f"max err {err}"

    print("KERNEL_OK")
</pallas_src>

<mosaic_0001>
module attributes {stable_mosaic.version = 11 : i64} {
  func.func @kernel(%arg0: i32, %arg1: memref<1x4x256xf32, #tpu.memory_space<vmem>>, %arg2: memref<9x256xf32, #tpu.memory_space<vmem>>, %arg3: memref<9x4x4xf32, #tpu.memory_space<vmem>>, %arg4: memref<4x1xf32, #tpu.memory_space<vmem>>, %arg5: memref<9x4x4xf32, #tpu.memory_space<vmem>>, %arg6: memref<4x1xf32, #tpu.memory_space<vmem>>, %arg7: memref<1x4x256xf32, #tpu.memory_space<vmem>>) attributes {dimension_semantics = [#tpu.dimension_semantics<parallel>], iteration_bounds = array<i64: 2>, scalar_prefetch = 0 : i64, scratch_operands = 0 : i64, tpu.core_type = #tpu.core_type<tc>, window_params = [{transform_indices = @transform_0, window_bounds = array<i64: 1, 4, 256>}, {pipeline_mode = #tpu.pipeline_mode<synchronous>, transform_indices = @transform_1, window_bounds = array<i64: 9, 256>}, {pipeline_mode = #tpu.pipeline_mode<synchronous>, transform_indices = @transform_2, window_bounds = array<i64: 9, 4, 4>}, {pipeline_mode = #tpu.pipeline_mode<synchronous>, transform_indices = @transform_3, window_bounds = array<i64: 4, 1>}, {pipeline_mode = #tpu.pipeline_mode<synchronous>, transform_indices = @transform_4, window_bounds = array<i64: 9, 4, 4>}, {pipeline_mode = #tpu.pipeline_mode<synchronous>, transform_indices = @transform_5, window_bounds = array<i64: 4, 1>}, {transform_indices = @transform_6, window_bounds = array<i64: 1, 4, 256>}]} {
    %c0 = arith.constant 0 : index
    %c0_0 = arith.constant 0 : index
    %c0_1 = arith.constant 0 : index
    %0 = vector.load %arg1[%c0, %c0_0, %c0_1] : memref<1x4x256xf32, #tpu.memory_space<vmem>>, vector<1x4x256xf32>
    %1 = vector.shape_cast %0 : vector<1x4x256xf32> to vector<4x256xf32>
    %c0_2 = arith.constant 0 : index
    %c0_3 = arith.constant 0 : index
    %2 = vector.load %arg2[%c0_2, %c0_3] : memref<9x256xf32, #tpu.memory_space<vmem>>, vector<9x256xf32>
    %cst = arith.constant 0.000000e+00 : f32
    %3 = vector.broadcast %cst : f32 to vector<4x256xf32>
    %4 = arith.maximumf %1, %3 : vector<4x256xf32>
    %c0_4 = arith.constant 0 : index
    %c0_5 = arith.constant 0 : index
    %c0_6 = arith.constant 0 : index
    %5 = vector.load %arg3[%c0_4, %c0_5, %c0_6] : memref<9x4x4xf32, #tpu.memory_space<vmem>>, vector<9x4x4xf32>
    %6 = vector.extract_strided_slice %4 {offsets = [0, 239], sizes = [4, 17], strides = [1, 1]} : vector<4x256xf32> to vector<4x17xf32>
    %7 = vector.extract_strided_slice %4 {offsets = [0, 0], sizes = [4, 239], strides = [1, 1]} : vector<4x256xf32> to vector<4x239xf32>
    %8 = tpu.concatenate %6, %7 in 1 : vector<4x17xf32>, vector<4x239xf32> -> vector<4x256xf32>
    %9 = vector.extract_strided_slice %2 {offsets = [0, 0], sizes = [1, 256], strides = [1, 1]} : vector<9x256xf32> to vector<1x256xf32>
    %10 = vector.broadcast %9 : vector<1x256xf32> to vector<4x256xf32>
    %11 = arith.mulf %8, %10 : vector<4x256xf32>
    %12 = vector.extract_strided_slice %5 {offsets = [0, 0, 0], sizes = [1, 4, 4], strides = [1, 1, 1]} : vector<9x4x4xf32> to vector<1x4x4xf32>
    %13 = vector.shape_cast %12 : vector<1x4x4xf32> to vector<4x4xf32>
    %cst_7 = arith.constant dense<0.000000e+00> : vector<4x256xf32>
    %14 = tpu.matmul %13, %11, %cst_7 {dimension_numbers = #tpu.dot_dimension_numbers<[1], [0], [0], [1], [0, 0, 1, 1], [], []>} : vector<4x4xf32>, vector<4x256xf32>, vector<4x256xf32> -> vector<4x256xf32>
    %15 = vector.extract_strided_slice %4 {offsets = [0, 240], sizes = [4, 16], strides = [1, 1]} : vector<4x256xf32> to vector<4x16xf32>
    %16 = vector.extract_strided_slice %4 {offsets = [0, 0], sizes = [4, 240], strides = [1, 1]} : vector<4x256xf32> to vector<4x240xf32>
    %17 = tpu.concatenate %15, %16 in 1 : vector<4x16xf32>, vector<4x240xf32> -> vector<4x256xf32>
    %18 = vector.extract_strided_slice %2 {offsets = [1, 0], sizes = [1, 256], strides = [1, 1]} : vector<9x256xf32> to vector<1x256xf32>
    %19 = vector.broadcast %18 : vector<1x256xf32> to vector<4x256xf32>
    %20 = arith.mulf %17, %19 : vector<4x256xf32>
    %21 = vector.extract_strided_slice %5 {offsets = [1, 0, 0], sizes = [1, 4, 4], strides = [1, 1, 1]} : vector<9x4x4xf32> to vector<1x4x4xf32>
    %22 = vector.shape_cast %21 : vector<1x4x4xf32> to vector<4x4xf32>
    %cst_8 = arith.constant dense<0.000000e+00> : vector<4x256xf32>
    %23 = tpu.matmul %22, %20, %cst_8 {dimension_numbers = #tpu.dot_dimension_numbers<[1], [0], [0], [1], [0, 0, 1, 1], [], []>} : vector<4x4xf32>, vector<4x256xf32>, vector<4x256xf32> -> vector<4x256xf32>
    %24 = arith.addf %14, %23 : vector<4x256xf32>
    %25 = vector.extract_strided_slice %4 {offsets = [0, 241], sizes = [4, 15], strides = [1, 1]} : vector<4x256xf32> to vector<4x15xf32>
    %26 = vector.extract_strided_slice %4 {offsets = [0, 0], sizes = [4, 241], strides = [1, 1]} : vector<4x256xf32> to vector<4x241xf32>
    %27 = tpu.concatenate %25, %26 in 1 : vector<4x15xf32>, vector<4x241xf32> -> vector<4x256xf32>
    %28 = vector.extract_strided_slice %2 {offsets = [2, 0], sizes = [1, 256], strides = [1, 1]} : vector<9x256xf32> to vector<1x256xf32>
    %29 = vector.broadcast %28 : vector<1x256xf32> to vector<4x256xf32>
    %30 = arith.mulf %27, %29 : vector<4x256xf32>
    %31 = vector.extract_strided_slice %5 {offsets = [2, 0, 0], sizes = [1, 4, 4], strides = [1, 1, 1]} : vector<9x4x4xf32> to vector<1x4x4xf32>
    %32 = vector.shape_cast %31 : vector<1x4x4xf32> to vector<4x4xf32>
    %cst_9 = arith.constant dense<0.000000e+00> : vector<4x256xf32>
    %33 = tpu.matmul %32, %30, %cst_9 {dimension_numbers = #tpu.dot_dimension_numbers<[1], [0], [0], [1], [0, 0, 1, 1], [], []>} : vector<4x4xf32>, vector<4x256xf32>, vector<4x256xf32> -> vector<4x256xf32>
    %34 = arith.addf %24, %33 : vector<4x256xf32>
    %35 = vector.extract_strided_slice %4 {offsets = [0, 255], sizes = [4, 1], strides = [1, 1]} : vector<4x256xf32> to vector<4x1xf32>
    %36 = vector.extract_strided_slice %4 {offsets = [0, 0], sizes = [4, 255], strides = [1, 1]} : vector<4x256xf32> to vector<4x255xf32>
    %37 = tpu.concatenate %35, %36 in 1 : vector<4x1xf32>, vector<4x255xf32> -> vector<4x256xf32>
    %38 = vector.extract_strided_slice %2 {offsets = [3, 0], sizes = [1, 256], strides = [1, 1]} : vector<9x256xf32> to vector<1x256xf32>
    %39 = vector.broadcast %38 : vector<1x256xf32> to vector<4x256xf32>
    %40 = arith.mulf %37, %39 : vector<4x256xf32>
    %41 = vector.extract_strided_slice %5 {offsets = [3, 0, 0], sizes = [1, 4, 4], strides = [1, 1, 1]} : vector<9x4x4xf32> to vector<1x4x4xf32>
    %42 = vector.shape_cast %41 : vector<1x4x4xf32> to vector<4x4xf32>
    %cst_10 = arith.constant dense<0.000000e+00> : vector<4x256xf32>
    %43 = tpu.matmul %42, %40, %cst_10 {dimension_numbers = #tpu.dot_dimension_numbers<[1], [0], [0], [1], [0, 0, 1, 1], [], []>} : vector<4x4xf32>, vector<4x256xf32>, vector<4x256xf32> -> vector<4x256xf32>
    %44 = arith.addf %34, %43 : vector<4x256xf32>
    %45 = vector.extract_strided_slice %2 {offsets = [4, 0], sizes = [1, 256], strides = [1, 1]} : vector<9x256xf32> to vector<1x256xf32>
    %46 = vector.broadcast %45 : vector<1x256xf32> to vector<4x256xf32>
    %47 = arith.mulf %4, %46 : vector<4x256xf32>
    %48 = vector.extract_strided_slice %5 {offsets = [4, 0, 0], sizes = [1, 4, 4], strides = [1, 1, 1]} : vector<9x4x4xf32> to vector<1x4x4xf32>
    %49 = vector.shape_cast %48 : vector<1x4x4xf32> to vector<4x4xf32>
    %cst_11 = arith.constant dense<0.000000e+00> : vector<4x256xf32>
    %50 = tpu.matmul %49, %47, %cst_11 {dimension_numbers = #tpu.dot_dimension_numbers<[1], [0], [0], [1], [0, 0, 1, 1], [], []>} : vector<4x4xf32>, vector<4x256xf32>, vector<4x256xf32> -> vector<4x256xf32>
    %51 = arith.addf %44, %50 : vector<4x256xf32>
    %52 = vector.extract_strided_slice %4 {offsets = [0, 1], sizes = [4, 255], strides = [1, 1]} : vector<4x256xf32> to vector<4x255xf32>
    %53 = vector.extract_strided_slice %4 {offsets = [0, 0], sizes = [4, 1], strides = [1, 1]} : vector<4x256xf32> to vector<4x1xf32>
    %54 = tpu.concatenate %52, %53 in 1 : vector<4x255xf32>, vector<4x1xf32> -> vector<4x256xf32>
    %55 = vector.extract_strided_slice %2 {offsets = [5, 0], sizes = [1, 256], strides = [1, 1]} : vector<9x256xf32> to vector<1x256xf32>
    %56 = vector.broadcast %55 : vector<1x256xf32> to vector<4x256xf32>
    %57 = arith.mulf %54, %56 : vector<4x256xf32>
    %58 = vector.extract_strided_slice %5 {offsets = [5, 0, 0], sizes = [1, 4, 4], strides = [1, 1, 1]} : vector<9x4x4xf32> to vector<1x4x4xf32>
    %59 = vector.shape_cast %58 : vector<1x4x4xf32> to vector<4x4xf32>
    %cst_12 = arith.constant dense<0.000000e+00> : vector<4x256xf32>
    %60 = tpu.matmul %59, %57, %cst_12 {dimension_numbers = #tpu.dot_dimension_numbers<[1], [0], [0], [1], [0, 0, 1, 1], [], []>} : vector<4x4xf32>, vector<4x256xf32>, vector<4x256xf32> -> vector<4x256xf32>
    %61 = arith.addf %51, %60 : vector<4x256xf32>
    %62 = vector.extract_strided_slice %4 {offsets = [0, 15], sizes = [4, 241], strides = [1, 1]} : vector<4x256xf32> to vector<4x241xf32>
    %63 = vector.extract_strided_slice %4 {offsets = [0, 0], sizes = [4, 15], strides = [1, 1]} : vector<4x256xf32> to vector<4x15xf32>
    %64 = tpu.concatenate %62, %63 in 1 : vector<4x241xf32>, vector<4x15xf32> -> vector<4x256xf32>
    %65 = vector.extract_strided_slice %2 {offsets = [6, 0], sizes = [1, 256], strides = [1, 1]} : vector<9x256xf32> to vector<1x256xf32>
    %66 = vector.broadcast %65 : vector<1x256xf32> to vector<4x256xf32>
    %67 = arith.mulf %64, %66 : vector<4x256xf32>
    %68 = vector.extract_strided_slice %5 {offsets = [6, 0, 0], sizes = [1, 4, 4], strides = [1, 1, 1]} : vector<9x4x4xf32> to vector<1x4x4xf32>
    %69 = vector.shape_cast %68 : vector<1x4x4xf32> to vector<4x4xf32>
    %cst_13 = arith.constant dense<0.000000e+00> : vector<4x256xf32>
    %70 = tpu.matmul %69, %67, %cst_13 {dimension_numbers = #tpu.dot_dimension_numbers<[1], [0], [0], [1], [0, 0, 1, 1], [], []>} : vector<4x4xf32>, vector<4x256xf32>, vector<4x256xf32> -> vector<4x256xf32>
    %71 = arith.addf %61, %70 : vector<4x256xf32>
    %72 = vector.extract_strided_slice %4 {offsets = [0, 16], sizes = [4, 240], strides = [1, 1]} : vector<4x256xf32> to vector<4x240xf32>
    %73 = vector.extract_strided_slice %4 {offsets = [0, 0], sizes = [4, 16], strides = [1, 1]} : vector<4x256xf32> to vector<4x16xf32>
    %74 = tpu.concatenate %72, %73 in 1 : vector<4x240xf32>, vector<4x16xf32> -> vector<4x256xf32>
    %75 = vector.extract_strided_slice %2 {offsets = [7, 0], sizes = [1, 256], strides = [1, 1]} : vector<9x256xf32> to vector<1x256xf32>
    %76 = vector.broadcast %75 : vector<1x256xf32> to vector<4x256xf32>
    %77 = arith.mulf %74, %76 : vector<4x256xf32>
    %78 = vector.extract_strided_slice %5 {offsets = [7, 0, 0], sizes = [1, 4, 4], strides = [1, 1, 1]} : vector<9x4x4xf32> to vector<1x4x4xf32>
    %79 = vector.shape_cast %78 : vector<1x4x4xf32> to vector<4x4xf32>
    %cst_14 = arith.constant dense<0.000000e+00> : vector<4x256xf32>
    %80 = tpu.matmul %79, %77, %cst_14 {dimension_numbers = #tpu.dot_dimension_numbers<[1], [0], [0], [1], [0, 0, 1, 1], [], []>} : vector<4x4xf32>, vector<4x256xf32>, vector<4x256xf32> -> vector<4x256xf32>
    %81 = arith.addf %71, %80 : vector<4x256xf32>
    %82 = vector.extract_strided_slice %4 {offsets = [0, 17], sizes = [4, 239], strides = [1, 1]} : vector<4x256xf32> to vector<4x239xf32>
    %83 = vector.extract_strided_slice %4 {offsets = [0, 0], sizes = [4, 17], strides = [1, 1]} : vector<4x256xf32> to vector<4x17xf32>
    %84 = tpu.concatenate %82, %83 in 1 : vector<4x239xf32>, vector<4x17xf32> -> vector<4x256xf32>
    %85 = vector.extract_strided_slice %2 {offsets = [8, 0], sizes = [1, 256], strides = [1, 1]} : vector<9x256xf32> to vector<1x256xf32>
    %86 = vector.broadcast %85 : vector<1x256xf32> to vector<4x256xf32>
    %87 = arith.mulf %84, %86 : vector<4x256xf32>
    %88 = vector.extract_strided_slice %5 {offsets = [8, 0, 0], sizes = [1, 4, 4], strides = [1, 1, 1]} : vector<9x4x4xf32> to vector<1x4x4xf32>
    %89 = vector.shape_cast %88 : vector<1x4x4xf32> to vector<4x4xf32>
    %cst_15 = arith.constant dense<0.000000e+00> : vector<4x256xf32>
    %90 = tpu.matmul %89, %87, %cst_15 {dimension_numbers = #tpu.dot_dimension_numbers<[1], [0], [0], [1], [0, 0, 1, 1], [], []>} : vector<4x4xf32>, vector<4x256xf32>, vector<4x256xf32> -> vector<4x256xf32>
    %91 = arith.addf %81, %90 : vector<4x256xf32>
    %c0_16 = arith.constant 0 : index
    %c0_17 = arith.constant 0 : index
    %92 = vector.load %arg4[%c0_16, %c0_17] : memref<4x1xf32, #tpu.memory_space<vmem>>, vector<4x1xf32>
    %93 = vector.broadcast %92 : vector<4x1xf32> to vector<4x256xf32>
    %94 = arith.addf %91, %93 : vector<4x256xf32>
    %cst_18 = arith.constant 0.000000e+00 : f32
    %95 = vector.broadcast %cst_18 : f32 to vector<4x256xf32>
    %96 = arith.maximumf %94, %95 : vector<4x256xf32>
    %c0_19 = arith.constant 0 : index
    %c0_20 = arith.constant 0 : index
    %c0_21 = arith.constant 0 : index
    %97 = vector.load %arg5[%c0_19, %c0_20, %c0_21] : memref<9x4x4xf32, #tpu.memory_space<vmem>>, vector<9x4x4xf32>
    %98 = vector.extract_strided_slice %96 {offsets = [0, 239], sizes = [4, 17], strides = [1, 1]} : vector<4x256xf32> to vector<4x17xf32>
    %99 = vector.extract_strided_slice %96 {offsets = [0, 0], sizes = [4, 239], strides = [1, 1]} : vector<4x256xf32> to vector<4x239xf32>
    %100 = tpu.concatenate %98, %99 in 1 : vector<4x17xf32>, vector<4x239xf32> -> vector<4x256xf32>
    %101 = vector.extract_strided_slice %2 {offsets = [0, 0], sizes = [1, 256], strides = [1, 1]} : vector<9x256xf32> to vector<1x256xf32>
    %102 = vector.broadcast %101 : vector<1x256xf32> to vector<4x256xf32>
    %103 = arith.mulf %100, %102 : vector<4x256xf32>
    %104 = vector.extract_strided_slice %97 {offsets = [0, 0, 0], sizes = [1, 4, 4], strides = [1, 1, 1]} : vector<9x4x4xf32> to vector<1x4x4xf32>
    %105 = vector.shape_cast %104 : vector<1x4x4xf32> to vector<4x4xf32>
    %cst_22 = arith.constant dense<0.000000e+00> : vector<4x256xf32>
    %106 = tpu.matmul %105, %103, %cst_22 {dimension_numbers = #tpu.dot_dimension_numbers<[1], [0], [0], [1], [0, 0, 1, 1], [], []>} : vector<4x4xf32>, vector<4x256xf32>, vector<4x256xf32> -> vector<4x256xf32>
    %107 = vector.extract_strided_slice %96 {offsets = [0, 240], sizes = [4, 16], strides = [1, 1]} : vector<4x256xf32> to vector<4x16xf32>
    %108 = vector.extract_strided_slice %96 {offsets = [0, 0], sizes = [4, 240], strides = [1, 1]} : vector<4x256xf32> to vector<4x240xf32>
    %109 = tpu.concatenate %107, %108 in 1 : vector<4x16xf32>, vector<4x240xf32> -> vector<4x256xf32>
    %110 = vector.extract_strided_slice %2 {offsets = [1, 0], sizes = [1, 256], strides = [1, 1]} : vector<9x256xf32> to vector<1x256xf32>
    %111 = vector.broadcast %110 : vector<1x256xf32> to vector<4x256xf32>
    %112 = arith.mulf %109, %111 : vector<4x256xf32>
    %113 = vector.extract_strided_slice %97 {offsets = [1, 0, 0], sizes = [1, 4, 4], strides = [1, 1, 1]} : vector<9x4x4xf32> to vector<1x4x4xf32>
    %114 = vector.shape_cast %113 : vector<1x4x4xf32> to vector<4x4xf32>
    %cst_23 = arith.constant dense<0.000000e+00> : vector<4x256xf32>
    %115 = tpu.matmul %114, %112, %cst_23 {dimension_numbers = #tpu.dot_dimension_numbers<[1], [0], [0], [1], [0, 0, 1, 1], [], []>} : vector<4x4xf32>, vector<4x256xf32>, vector<4x256xf32> -> vector<4x256xf32>
    %116 = arith.addf %106, %115 : vector<4x256xf32>
    %117 = vector.extract_strided_slice %96 {offsets = [0, 241], sizes = [4, 15], strides = [1, 1]} : vector<4x256xf32> to vector<4x15xf32>
    %118 = vector.extract_strided_slice %96 {offsets = [0, 0], sizes = [4, 241], strides = [1, 1]} : vector<4x256xf32> to vector<4x241xf32>
    %119 = tpu.concatenate %117, %118 in 1 : vector<4x15xf32>, vector<4x241xf32> -> vector<4x256xf32>
    %120 = vector.extract_strided_slice %2 {offsets = [2, 0], sizes = [1, 256], strides = [1, 1]} : vector<9x256xf32> to vector<1x256xf32>
    %121 = vector.broadcast %120 : vector<1x256xf32> to vector<4x256xf32>
    %122 = arith.mulf %119, %121 : vector<4x256xf32>
    %123 = vector.extract_strided_slice %97 {offsets = [2, 0, 0], sizes = [1, 4, 4], strides = [1, 1, 1]} : vector<9x4x4xf32> to vector<1x4x4xf32>
    %124 = vector.shape_cast %123 : vector<1x4x4xf32> to vector<4x4xf32>
    %cst_24 = arith.constant dense<0.000000e+00> : vector<4x256xf32>
    %125 = tpu.matmul %124, %122, %cst_24 {dimension_numbers = #tpu.dot_dimension_numbers<[1], [0], [0], [1], [0, 0, 1, 1], [], []>} : vector<4x4xf32>, vector<4x256xf32>, vector<4x256xf32> -> vector<4x256xf32>
    %126 = arith.addf %116, %125 : vector<4x256xf32>
    %127 = vector.extract_strided_slice %96 {offsets = [0, 255], sizes = [4, 1], strides = [1, 1]} : vector<4x256xf32> to vector<4x1xf32>
    %128 = vector.extract_strided_slice %96 {offsets = [0, 0], sizes = [4, 255], strides = [1, 1]} : vector<4x256xf32> to vector<4x255xf32>
    %129 = tpu.concatenate %127, %128 in 1 : vector<4x1xf32>, vector<4x255xf32> -> vector<4x256xf32>
    %130 = vector.extract_strided_slice %2 {offsets = [3, 0], sizes = [1, 256], strides = [1, 1]} : vector<9x256xf32> to vector<1x256xf32>
    %131 = vector.broadcast %130 : vector<1x256xf32> to vector<4x256xf32>
    %132 = arith.mulf %129, %131 : vector<4x256xf32>
    %133 = vector.extract_strided_slice %97 {offsets = [3, 0, 0], sizes = [1, 4, 4], strides = [1, 1, 1]} : vector<9x4x4xf32> to vector<1x4x4xf32>
    %134 = vector.shape_cast %133 : vector<1x4x4xf32> to vector<4x4xf32>
    %cst_25 = arith.constant dense<0.000000e+00> : vector<4x256xf32>
    %135 = tpu.matmul %134, %132, %cst_25 {dimension_numbers = #tpu.dot_dimension_numbers<[1], [0], [0], [1], [0, 0, 1, 1], [], []>} : vector<4x4xf32>, vector<4x256xf32>, vector<4x256xf32> -> vector<4x256xf32>
    %136 = arith.addf %126, %135 : vector<4x256xf32>
    %137 = vector.extract_strided_slice %2 {offsets = [4, 0], sizes = [1, 256], strides = [1, 1]} : vector<9x256xf32> to vector<1x256xf32>
    %138 = vector.broadcast %137 : vector<1x256xf32> to vector<4x256xf32>
    %139 = arith.mulf %96, %138 : vector<4x256xf32>
    %140 = vector.extract_strided_slice %97 {offsets = [4, 0, 0], sizes = [1, 4, 4], strides = [1, 1, 1]} : vector<9x4x4xf32> to vector<1x4x4xf32>
    %141 = vector.shape_cast %140 : vector<1x4x4xf32> to vector<4x4xf32>
    %cst_26 = arith.constant dense<0.000000e+00> : vector<4x256xf32>
    %142 = tpu.matmul %141, %139, %cst_26 {dimension_numbers = #tpu.dot_dimension_numbers<[1], [0], [0], [1], [0, 0, 1, 1], [], []>} : vector<4x4xf32>, vector<4x256xf32>, vector<4x256xf32> -> vector<4x256xf32>
    %143 = arith.addf %136, %142 : vector<4x256xf32>
    %144 = vector.extract_strided_slice %96 {offsets = [0, 1], sizes = [4, 255], strides = [1, 1]} : vector<4x256xf32> to vector<4x255xf32>
    %145 = vector.extract_strided_slice %96 {offsets = [0, 0], sizes = [4, 1], strides = [1, 1]} : vector<4x256xf32> to vector<4x1xf32>
    %146 = tpu.concatenate %144, %145 in 1 : vector<4x255xf32>, vector<4x1xf32> -> vector<4x256xf32>
    %147 = vector.extract_strided_slice %2 {offsets = [5, 0], sizes = [1, 256], strides = [1, 1]} : vector<9x256xf32> to vector<1x256xf32>
    %148 = vector.broadcast %147 : vector<1x256xf32> to vector<4x256xf32>
    %149 = arith.mulf %146, %148 : vector<4x256xf32>
    %150 = vector.extract_strided_slice %97 {offsets = [5, 0, 0], sizes = [1, 4, 4], strides = [1, 1, 1]} : vector<9x4x4xf32> to vector<1x4x4xf32>
    %151 = vector.shape_cast %150 : vector<1x4x4xf32> to vector<4x4xf32>
    %cst_27 = arith.constant dense<0.000000e+00> : vector<4x256xf32>
    %152 = tpu.matmul %151, %149, %cst_27 {dimension_numbers = #tpu.dot_dimension_numbers<[1], [0], [0], [1], [0, 0, 1, 1], [], []>} : vector<4x4xf32>, vector<4x256xf32>, vector<4x256xf32> -> vector<4x256xf32>
    %153 = arith.addf %143, %152 : vector<4x256xf32>
    %154 = vector.extract_strided_slice %96 {offsets = [0, 15], sizes = [4, 241], strides = [1, 1]} : vector<4x256xf32> to vector<4x241xf32>
    %155 = vector.extract_strided_slice %96 {offsets = [0, 0], sizes = [4, 15], strides = [1, 1]} : vector<4x256xf32> to vector<4x15xf32>
    %156 = tpu.concatenate %154, %155 in 1 : vector<4x241xf32>, vector<4x15xf32> -> vector<4x256xf32>
    %157 = vector.extract_strided_slice %2 {offsets = [6, 0], sizes = [1, 256], strides = [1, 1]} : vector<9x256xf32> to vector<1x256xf32>
    %158 = vector.broadcast %157 : vector<1x256xf32> to vector<4x256xf32>
    %159 = arith.mulf %156, %158 : vector<4x256xf32>
    %160 = vector.extract_strided_slice %97 {offsets = [6, 0, 0], sizes = [1, 4, 4], strides = [1, 1, 1]} : vector<9x4x4xf32> to vector<1x4x4xf32>
    %161 = vector.shape_cast %160 : vector<1x4x4xf32> to vector<4x4xf32>
    %cst_28 = arith.constant dense<0.000000e+00> : vector<4x256xf32>
    %162 = tpu.matmul %161, %159, %cst_28 {dimension_numbers = #tpu.dot_dimension_numbers<[1], [0], [0], [1], [0, 0, 1, 1], [], []>} : vector<4x4xf32>, vector<4x256xf32>, vector<4x256xf32> -> vector<4x256xf32>
    %163 = arith.addf %153, %162 : vector<4x256xf32>
    %164 = vector.extract_strided_slice %96 {offsets = [0, 16], sizes = [4, 240], strides = [1, 1]} : vector<4x256xf32> to vector<4x240xf32>
    %165 = vector.extract_strided_slice %96 {offsets = [0, 0], sizes = [4, 16], strides = [1, 1]} : vector<4x256xf32> to vector<4x16xf32>
    %166 = tpu.concatenate %164, %165 in 1 : vector<4x240xf32>, vector<4x16xf32> -> vector<4x256xf32>
    %167 = vector.extract_strided_slice %2 {offsets = [7, 0], sizes = [1, 256], strides = [1, 1]} : vector<9x256xf32> to vector<1x256xf32>
    %168 = vector.broadcast %167 : vector<1x256xf32> to vector<4x256xf32>
    %169 = arith.mulf %166, %168 : vector<4x256xf32>
    %170 = vector.extract_strided_slice %97 {offsets = [7, 0, 0], sizes = [1, 4, 4], strides = [1, 1, 1]} : vector<9x4x4xf32> to vector<1x4x4xf32>
    %171 = vector.shape_cast %170 : vector<1x4x4xf32> to vector<4x4xf32>
    %cst_29 = arith.constant dense<0.000000e+00> : vector<4x256xf32>
    %172 = tpu.matmul %171, %169, %cst_29 {dimension_numbers = #tpu.dot_dimension_numbers<[1], [0], [0], [1], [0, 0, 1, 1], [], []>} : vector<4x4xf32>, vector<4x256xf32>, vector<4x256xf32> -> vector<4x256xf32>
    %173 = arith.addf %163, %172 : vector<4x256xf32>
    %174 = vector.extract_strided_slice %96 {offsets = [0, 17], sizes = [4, 239], strides = [1, 1]} : vector<4x256xf32> to vector<4x239xf32>
    %175 = vector.extract_strided_slice %96 {offsets = [0, 0], sizes = [4, 17], strides = [1, 1]} : vector<4x256xf32> to vector<4x17xf32>
    %176 = tpu.concatenate %174, %175 in 1 : vector<4x239xf32>, vector<4x17xf32> -> vector<4x256xf32>
    %177 = vector.extract_strided_slice %2 {offsets = [8, 0], sizes = [1, 256], strides = [1, 1]} : vector<9x256xf32> to vector<1x256xf32>
    %178 = vector.broadcast %177 : vector<1x256xf32> to vector<4x256xf32>
    %179 = arith.mulf %176, %178 : vector<4x256xf32>
    %180 = vector.extract_strided_slice %97 {offsets = [8, 0, 0], sizes = [1, 4, 4], strides = [1, 1, 1]} : vector<9x4x4xf32> to vector<1x4x4xf32>
    %181 = vector.shape_cast %180 : vector<1x4x4xf32> to vector<4x4xf32>
    %cst_30 = arith.constant dense<0.000000e+00> : vector<4x256xf32>
    %182 = tpu.matmul %181, %179, %cst_30 {dimension_numbers = #tpu.dot_dimension_numbers<[1], [0], [0], [1], [0, 0, 1, 1], [], []>} : vector<4x4xf32>, vector<4x256xf32>, vector<4x256xf32> -> vector<4x256xf32>
    %183 = arith.addf %173, %182 : vector<4x256xf32>
    %c0_31 = arith.constant 0 : index
    %c0_32 = arith.constant 0 : index
    %184 = vector.load %arg6[%c0_31, %c0_32] : memref<4x1xf32, #tpu.memory_space<vmem>>, vector<4x1xf32>
    %185 = vector.broadcast %184 : vector<4x1xf32> to vector<4x256xf32>
    %186 = arith.addf %183, %185 : vector<4x256xf32>
    %187 = arith.addf %186, %1 : vector<4x256xf32>
    %188 = vector.shape_cast %187 : vector<4x256xf32> to vector<1x4x256xf32>
    %c0_33 = arith.constant 0 : index
    %c0_34 = arith.constant 0 : index
    %c0_35 = arith.constant 0 : index
    %189 = vector.load %arg7[%c0_33, %c0_34, %c0_35] : memref<1x4x256xf32, #tpu.memory_space<vmem>>, vector<1x4x256xf32>
    tpu.vector_store %arg7[%c0_33, %c0_34, %c0_35], %188 {strides = array<i32>} : memref<1x4x256xf32, #tpu.memory_space<vmem>>, vector<1x4x256xf32>,
    return
  }
  func.func @transform_0(%arg0: i32) -> (i32, i32, i32) {
    %c0_i32 = arith.constant 0 : i32
    %c0_i32_0 = arith.constant 0 : i32
    %c0_i32_1 = arith.constant 0 : i32
    return %arg0, %c0_i32, %c0_i32_0 : i32, i32, i32
  }
  func.func @transform_1(%arg0: i32) -> (i32, i32) {
    %c0_i32 = arith.constant 0 : i32
    %c0_i32_0 = arith.constant 0 : i32
    %c0_i32_1 = arith.constant 0 : i32
    return %c0_i32, %c0_i32_0 : i32, i32
  }
  func.func @transform_2(%arg0: i32) -> (i32, i32, i32) {
    %c0_i32 = arith.constant 0 : i32
    %c0_i32_0 = arith.constant 0 : i32
    %c0_i32_1 = arith.constant 0 : i32
    %c0_i32_2 = arith.constant 0 : i32
    return %c0_i32, %c0_i32_0, %c0_i32_1 : i32, i32, i32
  }
  func.func @transform_3(%arg0: i32) -> (i32, i32) {
    %c0_i32 = arith.constant 0 : i32
    %c0_i32_0 = arith.constant 0 : i32
    %c0_i32_1 = arith.constant 0 : i32
    return %c0_i32, %c0_i32_0 : i32, i32
  }
  func.func @transform_4(%arg0: i32) -> (i32, i32, i32) {
    %c0_i32 = arith.constant 0 : i32
    %c0_i32_0 = arith.constant 0 : i32
    %c0_i32_1 = arith.constant 0 : i32
    %c0_i32_2 = arith.constant 0 : i32
    return %c0_i32, %c0_i32_0, %c0_i32_1 : i32, i32, i32
  }
  func.func @transform_5(%arg0: i32) -> (i32, i32) {
    %c0_i32 = arith.constant 0 : i32
    %c0_i32_0 = arith.constant 0 : i32
    %c0_i32_1 = arith.constant 0 : i32
    return %c0_i32, %c0_i32_0 : i32, i32
  }
  func.func @transform_6(%arg0: i32) -> (i32, i32, i32) {
    %c0_i32 = arith.constant 0 : i32
    %c0_i32_0 = arith.constant 0 : i32
    %c0_i32_1 = arith.constant 0 : i32
    return %arg0, %c0_i32, %c0_i32_0 : i32, i32, i32
  }
}

</mosaic_0001>

<bundles_post_ra>
// kernel: tpu_custom_call.1
= control target key start
LH: loop header
LB: loop body
LE: loop exit
PB: predicated region body
PF: predicated region fallthrough
CT: control target
= control target key end

     0   :  { %11 = vsyncpa [#allocation3], 0  ;;  %s2816_s0 = inlined_call_operand.vmem [shape: f32[2,4,256], index: 0, kind: input, shape index: {}]   ;;  %s2817_s1 = inlined_call_operand.vmem [shape: f32[9,256], index: 1, kind: input, shape index: {}]   ;;  %s2818_s2 = inlined_call_operand.vmem [shape: f32[9,4,4], index: 2, kind: input, shape index: {}]   ;;  %s2819_s3 = inlined_call_operand.vmem [shape: f32[4,1], index: 3, kind: input, shape index: {}]   ;;  %s2820_s4 = inlined_call_operand.vmem [shape: f32[9,4,4], index: 4, kind: input, shape index: {}]   ;;  %s2821_s5 = inlined_call_operand.vmem [shape: f32[4,1], index: 5, kind: input, shape index: {}]   ;;  %s2822_s6 = inlined_call_operand.hbm [shape: f32[2,4,256], index: 6, kind: output, shape index: {}]  }
   0x1   :  { %13 = vsyncpa [#allocation3 + $0x1], 0  ;;  %s2376_s21 = smov 0   ;;  %s2378_s22 = smov 0  }
   0x2   :  { %s2380_s23 = smov 0   ;;  %s2382_s24 = smov 0  }
   0x3 LB: > { %s2397_s25 = sadd.s32 4294967295, %s2328_s24   ;;  %s2113_s26 = sadd.s32 4294967294, %s2328_s24   ;;  %s2328_s24 = sphi %s2382_s24, %s2828_s24   ;;  %s2324_s23 = sphi %s2380_s23, %s2827_s23   ;;  %s2320_s22 = sphi %s2378_s22, %s2826_s22   ;;  %s2316_s21 = sphi %s2376_s21, %s2825_s21  }
   0x4   : > { %s2401_s27 = sadd.s32 1, %s2328_s24   ;;  %s157_s28 = sadd.s32 1, %s2324_s23 }
   0x5   : > { %s154_s29 = ssub.s32 %s2328_s24, %s2401_s27  ;;  %p167_p0 = scmp.ne.s32.totalorder %s2324_s23, %s2320_s22 }
   0x6   : > { %p155_p1 = scmp.eq.s32.totalorder %s154_s29, 0  ;;  %p168_p2 = scmp.eq.s32.totalorder %s2397_s25, 1 }
   0x7   : > { %p173_p3 = scmp.ne.s32.totalorder %s2320_s22, %s2316_s21  ;;  %p174_p4 = scmp.eq.s32.totalorder %s2113_s26, 1 }
   0x8   : > { %s2412_s30 = scalar_select %p155_p1, %s2324_s23, %s157_s28  }
   0x9   : > { %p2414_p5 = por %p168_p2, %p167_p0  ;;  %p2418_p6 = por %p174_p4, %p173_p3 }
   0xa   : > { %p2116_p7 = scmp.ge.s32.totalorder %s2328_s24, 1  ;;  %p215_p8 = scmp.lt.s32.totalorder %s2328_s24, 3 }
   0xc   : > { %p216_p9 = pnand %p2116_p7, %p215_p8 }
   0xd   : > { %p245_p10 = scmp.lt.s32.totalorder (!%p216_p9), %s2397_s25, 1  ;;  %v2330_v1 = vmov (!%p216_p9), 0.0   ;;  %s2331_s14 = smov (!%p216_p9), 17   ;;  %v1176_v4 = vld [vmem:[%s2819_s3] sm:$0xf] (!%p216_p9)  ;;  %v2339_v5 = vmov (!%p216_p9), 0   ;;  %v277_v6 = vlaneseq (!%p216_p9) }
   0xe   : > { %219 = sbr.rel (%p216_p9) target bundleno = 856 (0x358), region = 44  ;;  %382 = vmatprep.mubr.f32.mxu0 (!%p216_p9), %v2330_v1  ;;  %1292 = vmatprep.mubr.f32.mxu1 (!%p216_p9), %v2330_v1  ;;  %s2332_s15 = smov (!%p216_p9), 16   ;;  %v2472_v10 = vld [vmem:[%s2817_s1] sm:$0xff] (!%p216_p9)  ;;  %v2477_v11 = vld [vmem:[%s2817_s1 + $0x8] sm:$0xff] (!%p216_p9)  ;;  %vm272_vm0 = vcmask (!%p216_p9), 138240   ;;  %vm292_vm1 = vcmask (!%p216_p9), 130048  }
   0xf   : > { %s2333_s16 = smov (!%p216_p9), 15   ;;  %s2334_s17 = smov (!%p216_p9), 1   ;;  %2264 = vset.pattern.permute.xlu0 (!%p216_p9), %v2339_v5  ;;  %v2465_v7 = vshrl.u32 (!%p216_p9), %v277_v6, 7  ;;  %vm311_vm2 = vcmask (!%p216_p9), 1043456   ;;  %vm474_vm3 = vcmask (!%p216_p9), 121856   ;;  %vm307_vm4 = vcmask (!%p216_p9), 31744  }
  0x10   : > { %s2335_s18 = smov (!%p216_p9), 127   ;;  %s2336_s19 = smov (!%p216_p9), 113   ;;  %v257_v30 = vld [vmem:[%s2818_s2 + $0x4] sm:$0xf] (!%p216_p9)  ;;  %vm576_vm5 = vcmask (!%p216_p9), 7168   ;;  %vm772_vm6 = vcmask (!%p216_p9), 1039360  }
  0x11   : > { %s2337_s20 = smov (!%p216_p9), 112   ;;  %s2338_s26 = smov (!%p216_p9), 111   ;;  %v279_v8 = vsub.s32 (!%p216_p9), 0, %v2465_v7  ;;  %v299_v9 = vsub.s32 (!%p216_p9), 1, %v2465_v7  ;;  %v481_v17 = vsub.s32 (!%p216_p9), 2, %v2465_v7  ;;  %v583_v33 = vsub.s32 (!%p216_p9), 3, %v2465_v7 }
  0x12   : > { %v675_v34 = vsub.s32 (!%p216_p9), 4, %v2465_v7  ;;  %v256_v46 = vld [vmem:[%s2818_s2] sm:$0xf] (!%p216_p9)  ;;  %v258_v53 = vld [vmem:[%s2818_s2 + $0x8] sm:$0xf] (!%p216_p9)  ;;  %v780_v55 = vsub.s32 (!%p216_p9), 5, %v2465_v7 }
  0x13   : > { %v2480_v14 = vrot.slane (!%p216_p9), %v2477_v11, %v279_v8  ;;  %v2483_v15 = vrot.slane (!%p216_p9), %v2472_v10, %v299_v9  ;;  %v2486_v16 = vrot.slane (!%p216_p9), %v2477_v11, %v299_v9  ;;  %v2490_v18 = vrot.slane (!%p216_p9), %v2472_v10, %v279_v8  ;;  %v259_v60 = vld [vmem:[%s2818_s2 + $0xc] sm:$0xf] (!%p216_p9)  ;;  %v260_v9 = vld [vmem:[%s2818_s2 + $0x10] sm:$0xf] (!%p216_p9) }
  0x14   : > { %v2500_v28 = vrot.slane (!%p216_p9), %v2477_v11, %v481_v17  ;;  %v2516_v37 = vrot.slane (!%p216_p9), %v2472_v10, %v481_v17  ;;  %v2522_v40 = vrot.slane (!%p216_p9), %v2477_v11, %v583_v33  ;;  %v2525_v42 = vrot.slane (!%p216_p9), %v2472_v10, %v675_v34 }
  0x15   : > { %s246_s9 = scalar_select %p245_p10, %s2397_s25, 1  ;;  %v2528_v43 = vrot.slane %v2477_v11, %v675_v34  ;;  %v2541_v49 = vrot.slane %v2472_v10, %v583_v33  ;;  %v2557_v58 = vrot.slane %v2477_v11, %v780_v55  ;;  %v882_v62 = vsub.s32 6, %v2465_v7  ;;  %v2625_v34 = vld [vmem:[%s2817_s1 + $0x10] ss:$0 sm:$0xff] }
  0x16   : > { %vm874_vm7 = vcmask 924672   ;;  %vm976_vm8 = vcmask 916480   ;;  %vm1078_vm9 = vcmask 908288  }
  0x17   : > { %s2181_s10 = sshll.u32 %s246_s9, 3  ;;  %v683_v48 = vcombine.low %v2525_v42, %v2528_v43  ;;  %v2574_v5 = vrot.slane %v2477_v11, %v882_v62 }
  0x18   : > { %s249_s13 = scalar_lea.vmem %s2816_s0, %s2181_s10 }
  0x19   : > { %v2429_v0 = vld [vmem:[%s249_s13] sm:$0xff] }
  0x1a   : > { %v2433_v2 = vmax.f32 %v2429_v0, 0.0 }
  0x1c   : > { %v266_v3 = vcombine.high %v2433_v2, %v2433_v2  ;;  %v685_v51 = vmul.f32 %v683_v48, %v2433_v2 }
  0x1e   : > { %267 = vrot.lane.b32.xlu1 %v266_v3, %s2331_s14  ;;  %287 = vrot.lane.b32.xlu0 %v266_v3, %s2332_s15  ;;  %v687_v54 = vcombine.high %v685_v51, %v685_v51 }
  0x22   : > { %270 = vrot.lane.b32.xlu1 %v2433_v2, %s2331_s14  ;;  %290 = vrot.lane.b32.xlu0 %v2433_v2, %s2332_s15 }
  0x26   : > { %472 = vrot.lane.b32.xlu1 %v2433_v2, %s2333_s16  ;;  %469 = vrot.lane.b32.xlu0 %v266_v3, %s2333_s16 }
  0x2a   : > { %574 = vrot.lane.b32.xlu1 %v2433_v2, %s2334_s17  ;;  %571 = vrot.lane.b32.xlu0 %v266_v3, %s2334_s17 }
  0x2e   : > { %770 = vrot.lane.b32.xlu1 %v266_v3, %s2335_s18  ;;  %768 = vrot.lane.b32.xlu0 %v2433_v2, %s2335_s18 }
  0x32   : > { %872 = vrot.lane.b32.xlu1 %v266_v3, %s2336_s19  ;;  %870 = vrot.lane.b32.xlu0 %v2433_v2, %s2336_s19 }
  0x36   : > { %974 = vrot.lane.b32.xlu1 %v266_v3, %s2337_s20  ;;  %972 = vrot.lane.b32.xlu0 %v2433_v2, %s2337_s20 }
  0x3a   : > { %1076 = vrot.lane.b32.xlu1 %v266_v3, %s2338_s26  ;;  %1074 = vrot.lane.b32.xlu0 %v2433_v2, %s2338_s26  ;;  %v2568_v3 = vrot.slane %v2472_v10, %v780_v55 }
  0x3e   : > { %1179 = vperm.xlu0 %2264, %v1176_v4  }
  0x90   : > { %v268_v12 = vpop.permute.xlu1 %267  ;;  %v288_v13 = vpop.permute.xlu0 %287 }
  0x94   : > { %v271_v19 = vpop.permute.xlu1 %270  ;;  %v291_v20 = vpop.permute.xlu0 %290 }
  0x95   : > { %v273_v21 = vsel %vm272_vm0, %v271_v19, %v268_v12  ;;  %v276_v22 = vsel %vm272_vm0, %v268_v12, %v271_v19  ;;  %v293_v23 = vsel %vm292_vm1, %v291_v20, %v288_v13  ;;  %v296_v24 = vsel %vm292_vm1, %v288_v13, %v291_v20 }
  0x96   : > { %v286_v25 = vmul.f32 %v2480_v14, %v273_v21  ;;  %v305_v26 = vmul.f32 %v2483_v15, %v296_v24  ;;  %v306_v27 = vmul.f32 %v2486_v16, %v293_v23  ;;  %v285_v29 = vmul.f32 %v2490_v18, %v276_v22  ;;  %v261_v24 = vld [vmem:[%s2818_s2 + $0x14] sm:$0xf] }
  0x97   : > { %v984_v13 = vsub.s32 7, %v2465_v7  ;;  %v2586_v20 = vrot.slane %v2472_v10, %v882_v62 }
  0x98   : > { %2120 = vmatprep.subr.msk.mxu0 %vm311_vm2, %v306_v27  ;;  %v473_v31 = vpop.permute.xlu1 %472  ;;  %v470_v32 = vpop.permute.xlu0 %469 }
  0x99   : > { %2121 = vmatpush1.msk.msra.mxu0 %vm311_vm2, %v305_v26  ;;  %v475_v35 = vsel %vm474_vm3, %v473_v31, %v470_v32  ;;  %v478_v38 = vsel %vm474_vm3, %v470_v32, %v473_v31  ;;  %v2592_v22 = vrot.slane %v2477_v11, %v984_v13  ;;  %v2603_v11 = vrot.slane %v2472_v10, %v984_v13  ;;  %v262_v10 = vld [vmem:[%s2818_s2 + $0x18] sm:$0xf] }
  0x9a   : > { %2122 = vmatmul.mubr.msk.f32.vlgmr.msra.gmra.mrb[0].mxu0 %vm307_vm4, %v257_v30  ;;  %2123 = vmatprep.subr.msk.mxu0 %vm311_vm2, %v286_v25  ;;  %v488_v36 = vmul.f32 %v2500_v28, %v475_v35  ;;  %v487_v45 = vmul.f32 %v2516_v37, %v478_v38  ;;  %v2611_v30 = vld [vmem:[%s2817_s1 + $0x18] ss:$0 sm:$0xff]  ;;  %v263_v38 = vld [vmem:[%s2818_s2 + $0x1c] sm:$0xf] }
  0x9b   : > { %2124 = vmatpush1.msk.msra.mxu0 %vm311_vm2, %v285_v29  ;;  %462 = vmatprep.mubr.f32.mxu0 %v2330_v1 }
  0x9c   : > { %2126 = vmatprep.subr.msk.mxu0 %vm311_vm2, %v488_v36  ;;  %v575_v39 = vpop.permute.xlu1 %574  ;;  %v572_v41 = vpop.permute.xlu0 %571 }
  0x9d   : > { %v577_v44 = vsel %vm576_vm5, %v575_v39, %v572_v41  ;;  %v580_v50 = vsel %vm576_vm5, %v572_v41, %v575_v39  ;;  %v264_v39 = vld [vmem:[%s2818_s2 + $0x20] sm:$0xf] }
  0x9e   : > { %v590_v47 = vmul.f32 %v2522_v40, %v577_v44  ;;  %v589_v52 = vmul.f32 %v2541_v49, %v580_v50 }
  0xa0   : > { %v771_v56 = vpop.permute.xlu1 %770  ;;  %v769_v57 = vpop.permute.xlu0 %768 }
  0xa1   : > { %v777_v59 = vsel %vm772_vm6, %v771_v56, %v769_v57  ;;  %v773_v4 = vsel %vm772_vm6, %v769_v57, %v771_v56 }
  0xa2   : > { %2125 = vmatmul.mubr.msk.f32.vlgmr.msra.gmra.mrb[0].mxu0 %vm307_vm4, %v256_v46  ;;  %v787_v61 = vmul.f32 %v2557_v58, %v777_v59  ;;  %v786_v8 = vmul.f32 %v2568_v3, %v773_v4 }
  0xa3   : > { %2127 = vmatpush1.msk.msra.mxu0 %vm311_vm2, %v487_v45  ;;  %562 = vmatprep.mubr.f32.mxu0 %v2330_v1 }
  0xa4   : > { %2129 = vmatprep.subr.msk.mxu0 %vm311_vm2, %v590_v47  ;;  %v873_v63 = vpop.permute.xlu1 %872  ;;  %v871_v2 = vpop.permute.xlu0 %870 }
  0xa5   : > { %v879_v6 = vsel %vm874_vm7, %v873_v63, %v871_v2  ;;  %v875_v21 = vsel %vm874_vm7, %v871_v2, %v873_v63 }
  0xa6   : > { %v889_v12 = vmul.f32 %v2574_v5, %v879_v6  ;;  %v888_v23 = vmul.f32 %v2586_v20, %v875_v21  ;;  %v1188_v21 = vld [vmem:[%s2820_s4 + $0x8] sm:$0xf] }
  0xa8   : > { %v975_v17 = vpop.permute.xlu1 %974  ;;  %v973_v19 = vpop.permute.xlu0 %972 }
  0xa9   : > { %v981_v7 = vsel %vm976_vm8, %v975_v17, %v973_v19  ;;  %v977_v29 = vsel %vm976_vm8, %v973_v19, %v975_v17 }
  0xaa   : > { %2128 = vmatmul.mubr.msk.f32.vlgmr.msra.gmra.mrb[0].mxu0 %vm307_vm4, %v258_v53  ;;  %v991_v25 = vmul.f32 %v2592_v22, %v981_v7  ;;  %v990_v32 = vmul.f32 %v2603_v11, %v977_v29 }
  0xab   : > { %2130 = vmatpush1.msk.msra.mxu0 %vm311_vm2, %v589_v52  ;;  %664 = vmatprep.mubr.f32.mxu0 %v2330_v1 }
  0xac   : > { %2132 = vmatprep.subr.msk.mxu0 %vm311_vm2, %v687_v54  ;;  %v1077_v26 = vpop.permute.xlu1 %1076  ;;  %v1075_v27 = vpop.permute.xlu0 %1074 }
  0xad   : > { %v1083_v31 = vsel %vm1078_vm9, %v1077_v26, %v1075_v27  ;;  %v1079_v35 = vsel %vm1078_vm9, %v1075_v27, %v1077_v26 }
  0xae   : > { %v1093_v33 = vmul.f32 %v2611_v30, %v1083_v31  ;;  %v1092_v36 = vmul.f32 %v2625_v34, %v1079_v35 }
  0xb2   : > { %2131 = vmatmul.mubr.msk.f32.vlgmr.msra.gmra.mrb[0].mxu0 %vm307_vm4, %v259_v60  ;;  %v1187_v60 = vld [vmem:[%s2820_s4 + $0x4] sm:$0xf] }
  0xb3   : > { %2133 = vmatpush1.msk.msra.mxu0 %vm311_vm2, %v685_v51  ;;  %759 = vmatprep.mubr.f32.mxu0 %v2330_v1  ;;  %v2021_v51 = vld [vmem:[%s2821_s5] sm:$0xf] }
  0xb4   : > { %2135 = vmatprep.subr.msk.mxu0 %vm311_vm2, %v787_v61 }
  0xba   : > { %2134 = vmatmul.mubr.msk.f32.vlgmr.msra.gmra.mrb[0].mxu0 %vm307_vm4, %v260_v9 }
  0xbb   : > { %2136 = vmatpush1.msk.msra.mxu0 %vm311_vm2, %v786_v8  ;;  %861 = vmatprep.mubr.f32.mxu0 %v2330_v1 }
  0xbc   : > { %2138 = vmatprep.subr.msk.mxu0 %vm311_vm2, %v889_v12 }
  0xbd   : > { %v1180_v41 = vpop.permute.xlu0 %1179 }
  0xc2   : > { %2137 = vmatmul.mubr.msk.f32.vlgmr.msra.gmra.mrb[0].mxu0 %vm307_vm4, %v261_v24 }
  0xc3   : > { %2139 = vmatpush1.msk.msra.mxu0 %vm311_vm2, %v888_v23  ;;  %963 = vmatprep.mubr.f32.mxu0 %v2330_v1 }
  0xc4   : > { %2141 = vmatprep.subr.msk.mxu0 %vm311_vm2, %v991_v25  ;;  %v1189_v25 = vld [vmem:[%s2820_s4 + $0xc] sm:$0xf] }
  0xca   : > { %2140 = vmatmul.mubr.msk.f32.vlgmr.msra.gmra.mrb[0].mxu0 %vm307_vm4, %v262_v10 }
  0xcb   : > { %2142 = vmatpush1.msk.msra.mxu0 %vm311_vm2, %v990_v32  ;;  %1065 = vmatprep.mubr.f32.mxu0 %v2330_v1 }
  0xcc   : > { %2146 = vmatprep.subr.msk.mxu0 %vm311_vm2, %v1093_v33 }
  0xd2   : > { %2143 = vmatmul.mubr.msk.f32.vlgmr.msra.gmra.mrb[0].mxu0 %vm307_vm4, %v263_v38 }
  0xd3   : > { %2147 = vmatpush1.msk.msra.mxu0 %vm311_vm2, %v1092_v36  ;;  %1167 = vmatprep.mubr.f32.mxu0 %v2330_v1 }
  0xda   : > { %2148 = vmatmul.mubr.msk.f32.vlgmr.msra.gmra.mrb[0].mxu0 %vm307_vm4, %v264_v39 }
 0x1ad   : > { %v1169_v44 = vpop.f32.mrb[0].mxu0 }
 0x1ae   : > { %v1171_v45 = vpop.f32.mrb[1].mxu0  ;;  %v1182_v47 = vadd.f32 %v1180_v41, %v1169_v44 }
 0x1af   : > { %v1183_v46 = vadd.f32 %v1180_v41, %v1171_v45 }
 0x1b0   : > { %v2642_v50 = vmax.f32 %v1182_v47, 0.0 }
 0x1b1   : > { %v1185_v48 = vmax.f32 %v1183_v46, 0.0 }
 0x1b3   : > { %1196 = vrot.lane.b32.xlu0 %v1185_v48, %s2331_s14  ;;  %1208 = vrot.lane.b32.xlu1 %v1185_v48, %s2332_s15 }
 0x1b7   : > { %1379 = vrot.lane.b32.xlu0 %v1185_v48, %s2333_s16  ;;  %1211 = vrot.lane.b32.xlu1 %v2642_v50, %s2332_s15 }
 0x1bb   : > { %1472 = vrot.lane.b32.xlu0 %v1185_v48, %s2334_s17  ;;  %1200 = vrot.lane.b32.xlu1 %v2642_v50, %s2331_s14 }
 0x1bf   : > { %1649 = vrot.lane.b32.xlu0 %v2642_v50, %s2335_s18  ;;  %1382 = vrot.lane.b32.xlu1 %v2642_v50, %s2333_s16 }
 0x1c3   : > { %1742 = vrot.lane.b32.xlu0 %v2642_v50, %s2336_s19  ;;  %1475 = vrot.lane.b32.xlu1 %v2642_v50, %s2334_s17 }
 0x1c7   : > { %1835 = vrot.lane.b32.xlu0 %v2642_v50, %s2337_s20  ;;  %1651 = vrot.lane.b32.xlu1 %v1185_v48, %s2335_s18 }
 0x1cb   : > { %1928 = vrot.lane.b32.xlu0 %v2642_v50, %s2338_s26  ;;  %1744 = vrot.lane.b32.xlu1 %v1185_v48, %s2336_s19  ;;  %s242_s19 = sand.u32 1, %s2320_s22  }
 0x1cc   : > { %s2040_s12 = scalar_lea.sflag [#allocation3], %s242_s19 }
 0x1cf   : > { %2024 = vperm.xlu0 %2264, %v2021_v51   ;;  %1837 = vrot.lane.b32.xlu1 %v1185_v48, %s2337_s20  ;;  %s2117_s20 = sshll.u32 %s242_s19, 3 }
 0x1d0   : > { %s244_s28 = scalar_lea.vmem [#allocation2], %s2117_s20 }
 0x1d1   : > { %s2054_s29 = sshll.u32 %s244_s28, 4  ;;  %s2776_s29 = int_to_ptr.vmem [resolvable:$true] %s2054_s29 }
 0x1d2   : > { %s2266_s13 = scalar_lea.vmem %s2776_s29, 128 }
 0x1d3   : > { %1930 = vrot.lane.b32.xlu1 %v1185_v48, %s2338_s26  ;;  %s2182_s26 = sshll.u32 %s2397_s25, 7  ;;  %p2267_p11 = scmp.ne.s32.totalorder %s2776_s29, %s2266_s13 }
 0x1d4   : > { %s2774_s11 = scalar_lea.hbm %s2822_s6, %s2182_s26  ;;  %s2340_s25 = smov [#allocation2]  }
 0x1d5   : > { %p2268_p12 = pnand %p2267_p11, %p2414_p5  ;;  %s2270_s14 = sshll.u32 %s2340_s25, 4  ;;  %s2271_s14 = int_to_ptr.vmem [resolvable:$false] %s2270_s14 }
 0x1d6   : > { %s2272_s15 = scalar_lea.vmem %s2271_s14, 256  ;;  %p2273_p0 = scmp.lt.s32.totalorder %s2776_s29, %s2271_s14 }
 0x1d7   : > { %p2269_p13 = pneg %p2268_p12  ;;  %p2274_p1 = scmp.lt.s32.totalorder %s2272_s15, %s2266_s13 }
 0x1d9   : > { %p2275_p2 = por %p2274_p1, %p2273_p0 }
 0x1db   : > { %p2276_p3 = pnand %p2275_p2, %p2269_p13 }
 0x225   : > { %v1209_v52 = vpop.permute.xlu1 %1208  ;;  %v1197_v53 = vpop.permute.xlu0 %1196 }
 0x229   : > { %v1212_v54 = vpop.permute.xlu1 %1211  ;;  %v1380_v2 = vpop.permute.xlu0 %1379 }
 0x22a   : > { %v1213_v55 = vsel %vm292_vm1, %v1212_v54, %v1209_v52  ;;  %v1216_v56 = vsel %vm292_vm1, %v1209_v52, %v1212_v54  ;;  %v2030_v52 = vcombine.high %v2429_v0, %v2429_v0 }
 0x22b   : > { %v1217_v57 = vmul.f32 %v1216_v56, %v2483_v15  ;;  %v1218_v59 = vmul.f32 %v1213_v55, %v2486_v16 }
 0x22d   : > { %2149 = vmatprep.subr.msk.mxu1 %vm311_vm2, %v1218_v59  ;;  %v1201_v61 = vpop.permute.xlu1 %1200 }
 0x22e   : > { %v1202_v62 = vsel %vm272_vm0, %v1201_v61, %v1197_v53  ;;  %v1205_v63 = vsel %vm272_vm0, %v1197_v53, %v1201_v61  ;;  %2150 = vmatpush1.msk.msra.mxu1 %vm311_vm2, %v1217_v57 }
 0x22f   : > { %v1206_v4 = vmul.f32 %v1205_v63, %v2490_v18  ;;  %v1207_v15 = vmul.f32 %v1202_v62, %v2480_v14  ;;  %2151 = vmatmul.mubr.msk.f32.vlgmr.msra.gmra.mrb[0].mxu1 %vm307_vm4, %v1187_v60  ;;  %v1186_v18 = vld [vmem:[%s2820_s4] sm:$0xf]  ;;  %v1473_v14 = vpop.permute.xlu0 %1472 }
 0x230   : > { %1372 = vmatprep.mubr.f32.mxu1 %v2330_v1 }
 0x231   : > { %2152 = vmatprep.subr.msk.mxu1 %vm311_vm2, %v1207_v15  ;;  %v1383_v16 = vpop.permute.xlu1 %1382 }
 0x232   : > { %v1384_v6 = vsel %vm474_vm3, %v1383_v16, %v1380_v2  ;;  %2153 = vmatpush1.msk.msra.mxu1 %vm311_vm2, %v1206_v4  ;;  %v1387_v8 = vsel %vm474_vm3, %v1380_v2, %v1383_v16 }
 0x233   : > { %v1389_v9 = vmul.f32 %v1384_v6, %v2500_v28  ;;  %v1388_v13 = vmul.f32 %v1387_v8, %v2516_v37  ;;  %v1650_v23 = vpop.permute.xlu0 %1649 }
 0x235   : > { %2155 = vmatprep.subr.msk.mxu1 %vm311_vm2, %v1389_v9  ;;  %v1476_v12 = vpop.permute.xlu1 %1475 }
 0x236   : > { %v1477_v17 = vsel %vm576_vm5, %v1476_v12, %v1473_v14  ;;  %v1480_v28 = vsel %vm576_vm5, %v1473_v14, %v1476_v12 }
 0x237   : > { %v1482_v19 = vmul.f32 %v1477_v17, %v2522_v40  ;;  %2154 = vmatmul.mubr.msk.f32.vlgmr.msra.gmra.mrb[0].mxu1 %vm307_vm4, %v1186_v18  ;;  %v1481_v37 = vmul.f32 %v1480_v28, %v2541_v49  ;;  %v1566_v40 = vmul.f32 %v1185_v48, %v2528_v43  ;;  %v1565_v49 = vmul.f32 %v2642_v50, %v2525_v42  ;;  %v1743_v27 = vpop.permute.xlu0 %1742  ;;  %v1190_v42 = vld [vmem:[%s2820_s4 + $0x10] sm:$0xf]  ;;  %v1193_v48 = vld [vmem:[%s2820_s4 + $0x1c] sm:$0xf] }
 0x238   : > { %2156 = vmatpush1.msk.msra.mxu1 %vm311_vm2, %v1388_v13  ;;  %1463 = vmatprep.mubr.f32.mxu1 %v2330_v1 }
 0x239   : > { %2158 = vmatprep.subr.msk.mxu1 %vm311_vm2, %v1482_v19  ;;  %v1652_v7 = vpop.permute.xlu1 %1651 }
 0x23a   : > { %v1657_v24 = vsel %vm772_vm6, %v1652_v7, %v1650_v23  ;;  %v1653_v29 = vsel %vm772_vm6, %v1650_v23, %v1652_v7 }
 0x23b   : > { %v1659_v26 = vmul.f32 %v1657_v24, %v2557_v58  ;;  %v1658_v58 = vmul.f32 %v1653_v29, %v2568_v3  ;;  %v1836_v33 = vpop.permute.xlu0 %1835  ;;  %v1191_v3 = vld [vmem:[%s2820_s4 + $0x14] sm:$0xf] }
 0x23d   : > { %v1745_v43 = vpop.permute.xlu1 %1744 }
 0x23e   : > { %v1750_v31 = vsel %vm874_vm7, %v1745_v43, %v1743_v27  ;;  %v1746_v35 = vsel %vm874_vm7, %v1743_v27, %v1745_v43 }
 0x23f   : > { %2157 = vmatmul.mubr.msk.f32.vlgmr.msra.gmra.mrb[0].mxu1 %vm307_vm4, %v1188_v21  ;;  %v1752_v32 = vmul.f32 %v1750_v31, %v2574_v5  ;;  %v1751_v5 = vmul.f32 %v1746_v35, %v2586_v20  ;;  %v1929_v41 = vpop.permute.xlu0 %1928  ;;  %v1192_v20 = vld [vmem:[%s2820_s4 + $0x18] sm:$0xf] }
 0x240   : > { %2159 = vmatpush1.msk.msra.mxu1 %vm311_vm2, %v1481_v37  ;;  %1556 = vmatprep.mubr.f32.mxu1 %v2330_v1 }
 0x241   : > { %2161 = vmatprep.subr.msk.mxu1 %vm311_vm2, %v1566_v40  ;;  %v1838_v10 = vpop.permute.xlu1 %1837 }
 0x242   : > { %v1843_v36 = vsel %vm976_vm8, %v1838_v10, %v1836_v33  ;;  %v1839_v44 = vsel %vm976_vm8, %v1836_v33, %v1838_v10 }
 0x243   : > { %v1845_v38 = vmul.f32 %v1843_v36, %v2592_v22  ;;  %v1844_v22 = vmul.f32 %v1839_v44, %v2603_v11  ;;  %v1194_v11 = vld [vmem:[%s2820_s4 + $0x20] sm:$0xf] }
 0x245   : > { %v1931_v39 = vpop.permute.xlu1 %1930 }
 0x246   : > { %v1936_v45 = vsel %vm1078_vm9, %v1931_v39, %v1929_v41  ;;  %v1932_v47 = vsel %vm1078_vm9, %v1929_v41, %v1931_v39 }
 0x247   : > { %2160 = vmatmul.mubr.msk.f32.vlgmr.msra.gmra.mrb[0].mxu1 %vm307_vm4, %v1189_v25  ;;  %v1938_v46 = vmul.f32 %v2611_v30, %v1936_v45  ;;  %v1937_v50 = vmul.f32 %v2625_v34, %v1932_v47 }
 0x248   : > { %2162 = vmatpush1.msk.msra.mxu1 %vm311_vm2, %v1565_v49  ;;  %1640 = vmatprep.mubr.f32.mxu1 %v2330_v1 }
 0x249   : > { %2164 = vmatprep.subr.msk.mxu1 %vm311_vm2, %v1659_v26 }
 0x24e   : > { %v2025_v30 = vpop.permute.xlu0 %2024 }
 0x24f   : > { %2163 = vmatmul.mubr.msk.f32.vlgmr.msra.gmra.mrb[0].mxu1 %vm307_vm4, %v1190_v42 }
 0x250   : > { %2165 = vmatpush1.msk.msra.mxu1 %vm311_vm2, %v1658_v58  ;;  %1733 = vmatprep.mubr.f32.mxu1 %v2330_v1 }
 0x251   : > { %2167 = vmatprep.subr.msk.mxu1 %vm311_vm2, %v1752_v32 }
 0x257   : > { %2166 = vmatmul.mubr.msk.f32.vlgmr.msra.gmra.mrb[0].mxu1 %vm307_vm4, %v1191_v3 }
 0x258   : > { %2168 = vmatpush1.msk.msra.mxu1 %vm311_vm2, %v1751_v5  ;;  %1826 = vmatprep.mubr.f32.mxu1 %v2330_v1 }
 0x259   : > { %2170 = vmatprep.subr.msk.mxu1 %vm311_vm2, %v1845_v38 }
 0x25f   : > { %2169 = vmatmul.mubr.msk.f32.vlgmr.msra.gmra.mrb[0].mxu1 %vm307_vm4, %v1192_v20 }
 0x260   : > { %2171 = vmatpush1.msk.msra.mxu1 %vm311_vm2, %v1844_v22  ;;  %1919 = vmatprep.mubr.f32.mxu1 %v2330_v1 }
 0x261   : > { %2173 = vmatprep.subr.msk.mxu1 %vm311_vm2, %v1938_v46 }
 0x267   : > { %2172 = vmatmul.mubr.msk.f32.vlgmr.msra.gmra.mrb[0].mxu1 %vm307_vm4, %v1193_v48 }
 0x268   : > { %2174 = vmatpush1.msk.msra.mxu1 %vm311_vm2, %v1937_v50  ;;  %2012 = vmatprep.mubr.f32.mxu1 %v2330_v1 }
 0x26f   : > { %2175 = vmatmul.mubr.msk.f32.vlgmr.msra.gmra.mrb[0].mxu1 %vm307_vm4, %v1194_v11 }
 0x342   : > { %v2014_v51 = vpop.f32.mrb[0].mxu1 }
 0x343   : > { %v2027_v34 = vadd.f32 %v2025_v30, %v2014_v51  ;;  %v2016_v53 = vpop.f32.mrb[1].mxu1 }
 0x344   : > { %v2028_v54 = vadd.f32 %v2025_v30, %v2016_v53 }
 0x345   : > { %v2032_v55 = vadd.f32 %v2027_v34, %v2429_v0 }
 0x346   : > { %v2033_v1 = vadd.f32 %v2030_v52, %v2028_v54 }
 0x348   : > { %v2036_v56 = vcombine.low %v2032_v55, %v2033_v1 }
 0x34a   : > { %2038 = vst [vmem:[%s244_s28] sm:$0xff] %v2036_v56 }
 0x34b   : > { %2279 = shalt.err (!%p2276_p3)
}
 0x34c   : > { %s2280_s16 = scalar_lea.hbm %s2774_s11, 128  ;;  %s2284_s19 = scalar_lea.hbm %s2822_s6, 256 }
 0x34d   : > { %p2281_p4 = scmp.ne.s32.totalorder %s2774_s11, %s2280_s16  ;;  %p2285_p9 = scmp.lt.u32.totalorder %s2774_s11, %s2822_s6 }
 0x34e   : > { %p2286_p10 = scmp.lt.u32.totalorder %s2284_s19, %s2280_s16  ;;  %p2288_p12 = scmp.lt.u32.totalorder %s2280_s16, %s2774_s11 }
 0x34f   : > { %p2282_p7 = pnand %p2281_p4, %p2414_p5 }
 0x350   : > { %p2287_p11 = por %p2286_p10, %p2285_p9 }
 0x351   : > { %p2283_p8 = pneg %p2282_p7 }
 0x352   : > { %p2289_p13 = por %p2288_p12, %p2287_p11 }
 0x354   : > { %p2290_p0 = pnand %p2289_p13, %p2283_p8 }
 0x356   : > { %2293 = shalt.err (!%p2290_p0)
}
 0x357   : > { %2215 = dma.vmem_to_hbm [thread:$0]  (%p2414_p5), %s2776_s29, 128, %s2774_s11, %s2040_s12  }
 0x358 PF: > { %p2221_p1 = scmp.ge.s32.totalorder %s2328_s24, 2  ;;  %s2066_s28 = sand.u32 1, %s2316_s21  }
 0x359   : > { %s2067_s9 = scalar_lea.sflag [#allocation3], %s2066_s28 }
 0x35a   : > { %p2218_p2 = pnand %p2221_p1, %p2418_p6 }
 0x35c   : > { %2311 = dma.done.wait (!%p2218_p2), %s2067_s9, 128  }
 0x35d   : > { %2313 = vsyncadd (!%p2218_p2), %s2067_s9, 4294967168  ;;  %p16_p3 = scmp.ge.s32.totalorder %s2401_s27, 4   ;;  %s2825_s21 = smov %s2320_s22 }
 0x35e   : > { %s2826_s22 = smov %s2324_s23  ;;  %s2827_s23 = smov %s2412_s30 }
 0x35f   : > { %s2828_s24 = smov %s2401_s27  ;;  %18 = sbr.rel (!%p16_p3) target bundleno = 3 (0x3), region = 79 }
 0x366   :  { %2072 = vsyncpa [#allocation3], 1 }
 0x367   :  { %2074 = vsyncpa [#allocation3 + $0x1], 1 }

</bundles_post_ra>
